<compile_context>
chip_gen: v7x
topology: tpu7x:2x2x1
jax: 0.10.0
libtpu: 0.0.40
codegen_flags: <defaults>
</compile_context>

<pallas_src>
import jax
import jax.numpy as jnp
from jax.experimental import pallas as pl
from jax.experimental.pallas import tpu as pltpu


def _pow_int(x, p):
    """x**p for a static integer p >= 0 via binary exponentiation (VPU muls)."""
    p = int(p)
    if p == 0:
        return jnp.ones_like(x)
    result = None
    base = x
    while p > 0:
        if p & 1:
            result = base if result is None else result * base
        p >>= 1
        if p:
            base = base * base
    return result


def _chip_generation():
    """Coarse TPU-generation probe for tile sizing (trace time, host Python)."""
    try:
        kind = jax.devices()[0].device_kind.lower()
    except Exception:
        return "unknown"
    if "v7" in kind:
        return "v7x"
    if "v6" in kind:
        return "v6e"
    if "v5" in kind:
        return "v5e"
    return "unknown"


def _make_envelope_kernel(p, coef0, coef1, coef2, scale, out_dtype):
    """env = 1 + x^p * (coef0 + x*(coef1 + coef2*x)), x = d*scale.

    When 1/cutoff is folded into the coefficients, scale == 1.0 and the
    per-element multiply by inv_cutoff disappears.
    """
    p = int(p)
    coef0 = float(coef0)
    coef1 = float(coef1)
    coef2 = float(coef2)
    scale = float(scale)

    def kernel(d_ref, o_ref):
        # Compute in f32 regardless of input dtype (matches the f32 reference).
        x = d_ref[...].astype(jnp.float32)
        if scale != 1.0:
            x = x * scale
        x_p = _pow_int(x, p)
        env = 1.0 + x_p * (coef0 + x * (coef1 + coef2 * x))
        o_ref[...] = env.astype(out_dtype)

    return kernel


def _poly_envelop_fused(distances, inv_cutoff, p, a, b, c):
    """Small-input path: plain JAX so XLA can fuse into neighboring ops."""
    s = distances.astype(jnp.float32) * inv_cutoff
    env = 1.0 + a * s ** p + b * s ** (p + 1) + c * s ** (p + 2)
    return env.astype(distances.dtype)


def poly_envelop_std(distances, *, cutoff, exponent, force_pallas=False):
    """Polynomial envelope (poly_envelop_std.forward) on TPU via Pallas.

    Accepts any-shape float arrays; internally flattens to a lane-dense slab.
    """
    cutoff = float(cutoff)
    inv_cutoff = 1.0 / cutoff
    p = int(exponent)
    assert p >= 0, "exponent must be a non-negative integer"
    a = -(p + 1) * (p + 2) / 2.0
    b = float(p * (p + 2))
    c = -p * (p + 1) / 2.0

    orig_shape = distances.shape
    out_dtype = distances.dtype
    total = int(distances.size)
    itemsize = jnp.dtype(out_dtype).itemsize

    # Tiny inputs: pallas_call launch/prologue cost dwarfs the HBM traffic.
    if total == 0 or (not force_pallas and total * itemsize < (1 << 20)):
        return _poly_envelop_fused(distances, inv_cutoff, p, a, b, c)

    # Fold 1/cutoff into the coefficients (drops one VPU mul per element) when
    # the folded coefficients stay comfortably inside f32 dynamic range.
    fold = True
    try:
        if not (1e-30 < abs(cutoff) ** (p + 2) < 1e30):
            fold = False
    except OverflowError:
        fold = False
    if fold:
        coef0 = a * inv_cutoff ** p
        coef1 = b * inv_cutoff ** (p + 1)
        coef2 = c * inv_cutoff ** (p + 2)
        scale = 1.0
    else:
        coef0, coef1, coef2, scale = a, b, c, inv_cutoff

    # Lane-dense slab: flatten to [rows, lane], lane a multiple of 128.
    lane = 512 if total >= 512 else 128
    rows = -(-total // lane)
    padded_total = rows * lane              # at most lane-1 padding elements

    flat = distances.reshape(-1)
    needs_pad = padded_total != total
    if needs_pad:
        flat = jnp.pad(flat, (0, padded_total - total))
    slab = flat.reshape(rows, lane)

    # ---- Generation-specific tile sizing ------------------------------------
    gen = _chip_generation()
    tile_target = {"v5e": 2 << 20, "unknown": 2 << 20,
                   "v6e": 4 << 20, "v7x": 8 << 20}[gen]
    # Conservative per-row VMEM estimate (f32 compute, in+out double-buffered).
    bytes_per_row = lane * max(4, itemsize)

    if rows <= 8:
        block_rows = rows                   # full extent — always legal
    else:
        block_rows = min(tile_target // bytes_per_row, rows)
        block_rows = max(8, (block_rows // 8) * 8)
        if gen == "v7x":
            # 2 TensorCores: prefer >= 4 grid steps so both can stream.
            while block_rows > 8 and -(-rows // block_rows) < 4:
                block_rows = max(8, ((block_rows // 2) // 8) * 8)

    n_blocks = pl.cdiv(rows, block_rows)    # partial last block masked by Pallas

    cp_kwargs = dict(dimension_semantics=("parallel",))
    if gen == "v7x":
        cp_kwargs["vmem_limit_bytes"] = 40 << 20
    # TODO(synk): verify on v7x whether ("parallel",) shards the 1-D grid across
    # both TensorCores; if not, switch to pltpu.CORE_PARALLEL for that axis.

    kernel = _make_envelope_kernel(p, coef0, coef1, coef2, scale, out_dtype)

    out = pl.pallas_call(
        kernel,
        out_shape=jax.ShapeDtypeStruct((rows, lane), out_dtype),
        grid=(n_blocks,),
        in_specs=[pl.BlockSpec((block_rows, lane), lambda i: (i, 0))],
        out_specs=pl.BlockSpec((block_rows, lane), lambda i: (i, 0)),
        compiler_params=pltpu.CompilerParams(**cp_kwargs),
        cost_estimate=pl.CostEstimate(
            flops=10 * padded_total,
            transcendentals=0,
            bytes_accessed=2 * padded_total * itemsize),
    )(slab)

    if needs_pad:
        return out.reshape(-1)[:total].reshape(orig_shape)
    return out.reshape(orig_shape)


def poly_envelop_std_ref(distances, *, cutoff, exponent):
    """Pure-JAX reference matching the PyTorch module exactly."""
    inv_cutoff = 1.0 / float(cutoff)
    p = int(exponent)
    a = -(p + 1) * (p + 2) / 2.0
    b = float(p * (p + 2))
    c = -p * (p + 1) / 2.0
    s = distances * inv_cutoff
    return 1.0 + a * s ** p + b * s ** (p + 1) + c * s ** (p + 2)


if __name__ == "__main__":
    key = jax.random.PRNGKey(0)
    cutoff, exponent = 5.0, 6

    # Test 1: module-consistent shape, lane-aligned (no pad, no slice).
    k1, k2, k3 = jax.random.split(key, 3)
    d1 = jax.random.uniform(k1, (16, 128), dtype=jnp.float32,
                            minval=0.0, maxval=cutoff)
    out1 = jax.block_until_ready(
        poly_envelop_std(d1, cutoff=cutoff, exponent=exponent,
                         force_pallas=True))
    ref1 = poly_envelop_std_ref(d1, cutoff=cutoff, exponent=exponent)
    assert out1.shape == d1.shape and out1.dtype == d1.dtype
    assert jnp.allclose(out1, ref1, rtol=1e-5, atol=1e-5), "mismatch (aligned)"

    # Test 2: un-aligned total -> exercises the small lane-pad + tail slice.
    d2 = jax.random.uniform(k2, (3, 700), dtype=jnp.float32,
                            minval=0.0, maxval=cutoff)
    out2 = jax.block_until_ready(
        poly_envelop_std(d2, cutoff=cutoff, exponent=exponent,
                         force_pallas=True))
    ref2 = poly_envelop_std_ref(d2, cutoff=cutoff, exponent=exponent)
    assert jnp.allclose(out2, ref2, rtol=1e-5, atol=1e-5), "mismatch (padded)"

    # Test 3: rows > 8 with a partial (masked) last grid block.
    d3 = jax.random.uniform(k3, (10340,), dtype=jnp.float32,
                            minval=0.0, maxval=cutoff)
    out3 = jax.block_until_ready(
        poly_envelop_std(d3, cutoff=cutoff, exponent=exponent,
                         force_pallas=True))
    ref3 = poly_envelop_std_ref(d3, cutoff=cutoff, exponent=exponent)
    assert jnp.allclose(out3, ref3, rtol=1e-5, atol=1e-5), "mismatch (partial block)"

    # Default dispatch (small-input fused path) must match as well.
    out4 = jax.block_until_ready(
        poly_envelop_std(d1, cutoff=cutoff, exponent=exponent))
    assert jnp.allclose(out4, ref1, rtol=1e-5, atol=1e-5), "fused path mismatch"

    print("KERNEL_OK")
</pallas_src>

<mosaic_0001>
module attributes {stable_mosaic.version = 11 : i64} {
  func.func @kernel(%arg0: i32, %arg1: memref<4x512xf32, #tpu.memory_space<vmem>>, %arg2: memref<4x512xf32, #tpu.memory_space<vmem>>) attributes {dimension_semantics = [#tpu.dimension_semantics<parallel>], iteration_bounds = array<i64: 1>, scalar_prefetch = 0 : i64, scratch_operands = 0 : i64, tpu.core_type = #tpu.core_type<tc>, window_params = [{transform_indices = @transform_0, window_bounds = array<i64: 4, 512>}, {transform_indices = @transform_1, window_bounds = array<i64: 4, 512>}]} {
    %c0 = arith.constant 0 : index
    %c0_0 = arith.constant 0 : index
    %0 = vector.load %arg1[%c0, %c0_0] : memref<4x512xf32, #tpu.memory_space<vmem>>, vector<4x512xf32>
    %1 = arith.mulf %0, %0 : vector<4x512xf32>
    %2 = arith.mulf %1, %1 : vector<4x512xf32>
    %3 = arith.mulf %1, %2 : vector<4x512xf32>
    %cst = arith.constant -5.376000e-05 : f32
    %4 = vector.broadcast %cst : f32 to vector<4x512xf32>
    %5 = arith.mulf %4, %0 : vector<4x512xf32>
    %cst_1 = arith.constant 6.144000e-04 : f32
    %6 = vector.broadcast %cst_1 : f32 to vector<4x512xf32>
    %7 = arith.addf %6, %5 : vector<4x512xf32>
    %8 = arith.mulf %0, %7 : vector<4x512xf32>
    %cst_2 = arith.constant -1.792000e-03 : f32
    %9 = vector.broadcast %cst_2 : f32 to vector<4x512xf32>
    %10 = arith.addf %9, %8 : vector<4x512xf32>
    %11 = arith.mulf %3, %10 : vector<4x512xf32>
    %cst_3 = arith.constant 1.000000e+00 : f32
    %12 = vector.broadcast %cst_3 : f32 to vector<4x512xf32>
    %13 = arith.addf %12, %11 : vector<4x512xf32>
    %c0_4 = arith.constant 0 : index
    %c0_5 = arith.constant 0 : index
    %14 = vector.load %arg2[%c0_4, %c0_5] : memref<4x512xf32, #tpu.memory_space<vmem>>, vector<4x512xf32>
    tpu.vector_store %arg2[%c0_4, %c0_5], %13 {strides = array<i32>} : memref<4x512xf32, #tpu.memory_space<vmem>>, vector<4x512xf32>,
    return
  }
  func.func @transform_0(%arg0: i32) -> (i32, i32) {
    %c0_i32 = arith.constant 0 : i32
    %c0_i32_0 = arith.constant 0 : i32
    return %arg0, %c0_i32 : i32, i32
  }
  func.func @transform_1(%arg0: i32) -> (i32, i32) {
    %c0_i32 = arith.constant 0 : i32
    %c0_i32_0 = arith.constant 0 : i32
    return %arg0, %c0_i32 : i32, i32
  }
}

</mosaic_0001>

<bundles_post_ra>
// kernel: tpu_custom_call.1
= control target key start
LH: loop header
LB: loop body
LE: loop exit
PB: predicated region body
PF: predicated region fallthrough
CT: control target
= control target key end

     0   :  { %6 = vsyncpa [#allocation3], 0  ;;  %s144_s0 = inlined_call_operand.hbm [shape: f32[4,512], index: 0, kind: input, shape index: {}]   ;;  %s145_s1 = inlined_call_operand.hbm [shape: f32[4,512], index: 1, kind: output, shape index: {}]  }
   0x1   :  { %7 = vsyncpa [#allocation4], 0  ;;  %s108_s6 = smov [#allocation2]   ;;  %s60_s10 = scalar_lea.hbm %s144_s0, 256 }
   0x2   :  { %s14_s7 = sshll.u32 %s108_s6, 4  ;;  %p61_p0 = scmp.ne.s32.totalorder %s144_s0, %s60_s10  ;;  %s15_s7 = int_to_ptr.vmem [resolvable:$true] %s14_s7 }
   0x3   :  { %p64_p1 = scmp.lt.u32.totalorder %s60_s10, %s144_s0 }
   0x5   :  { %p66_p2 = pnand %p64_p1, %p61_p0 }
   0x7   :  { %69 = shalt.err (!%p66_p2)
}
   0x8   :  { %s70_s15 = scalar_lea.vmem %s15_s7, 256  ;;  %p75_p4 = scmp.lt.s32.totalorder %s15_s7, %s15_s7 }
   0x9   :  { %p71_p3 = scmp.ne.s32.totalorder %s15_s7, %s70_s15  ;;  %p76_p5 = scmp.lt.s32.totalorder %s70_s15, %s70_s15 }
   0xb   :  { %p77_p6 = por %p76_p5, %p75_p4 }
   0xd   :  { %p78_p7 = pnand %p77_p6, %p71_p3 }
   0xf   :  { %81 = shalt.err (!%p78_p7)
}
  0x10   :  { %17 = dma.hbm_to_vmem [thread:$0]  %s144_s0, 256, %s15_s7, [#allocation3]  }
  0x11   :  { %104 = dma.done.wait [#allocation3], 256  }
  0x12   :  { %105 = vsyncadd [#allocation3], 4294967040  ;;  %v21_v0 = vld [vmem:[#allocation2] sm:$0xff]  ;;  %v22_v1 = vld [vmem:[#allocation2 + $0x8] sm:$0xff]  ;;  %s109_s18 = smov [#allocation5]  }
  0x13   :  { %v23_v2 = vmul.f32 %v21_v0, %v21_v0  ;;  %v29_v3 = vmul.f32 -5.376e-05, %v21_v0  ;;  %v24_v4 = vmul.f32 %v22_v1, %v22_v1  ;;  %v30_v5 = vmul.f32 -5.376e-05, %v22_v1  ;;  %s49_s0 = sshll.u32 %s109_s18, 4  ;;  %s50_s0 = int_to_ptr.vmem [resolvable:$true] %s49_s0 }
  0x14   :  { %s82_s19 = scalar_lea.vmem %s50_s0, 256  ;;  %p87_p9 = scmp.lt.s32.totalorder %s50_s0, %s50_s0 }
  0x15   :  { %v25_v6 = vmul.f32 %v23_v2, %v23_v2  ;;  %v31_v7 = vadd.f32 0.0006144, %v29_v3  ;;  %v26_v8 = vmul.f32 %v24_v4, %v24_v4  ;;  %v32_v9 = vadd.f32 0.0006144, %v30_v5  ;;  %p83_p8 = scmp.ne.s32.totalorder %s50_s0, %s82_s19  ;;  %p88_p10 = scmp.lt.s32.totalorder %s82_s19, %s82_s19 }
  0x17   :  { %v27_v10 = vmul.f32 %v25_v6, %v23_v2  ;;  %v33_v11 = vmul.f32 %v31_v7, %v21_v0  ;;  %v28_v12 = vmul.f32 %v26_v8, %v24_v4  ;;  %v34_v13 = vmul.f32 %v32_v9, %v22_v1  ;;  %p89_p11 = por %p88_p10, %p87_p9 }
  0x19   :  { %v35_v14 = vadd.f32 -0.001792, %v33_v11  ;;  %v36_v15 = vadd.f32 -0.001792, %v34_v13  ;;  %p90_p12 = pnand %p89_p11, %p83_p8 }
  0x1b   :  { %v37_v16 = vmul.f32 %v35_v14, %v27_v10  ;;  %v38_v17 = vmul.f32 %v36_v15, %v28_v12 }
  0x1d   :  { %v39_v18 = vadd.f32 1.0, %v37_v16  ;;  %v40_v19 = vadd.f32 1.0, %v38_v17 }
  0x1f   :  { %41 = vst [vmem:[#allocation5] sm:$0xff] %v39_v18  ;;  %42 = vst [vmem:[#allocation5 + $0x8] sm:$0xff] %v40_v19 }
  0x20   :  { %93 = shalt.err (!%p90_p12)
}
  0x21   :  { %s94_s22 = scalar_lea.hbm %s145_s1, 256 }
  0x22   :  { %p95_p13 = scmp.ne.s32.totalorder %s145_s1, %s94_s22  ;;  %p98_p0 = scmp.lt.u32.totalorder %s94_s22, %s145_s1 }
  0x24   :  { %p100_p1 = pnand %p98_p0, %p95_p13 }
  0x26   :  { %103 = shalt.err (!%p100_p1)
}
  0x27   :  { %52 = dma.vmem_to_hbm [thread:$0]  %s50_s0, 256, %s145_s1, [#allocation4]  }
  0x28   :  { %106 = dma.done.wait [#allocation4], 256  }
  0x29   :  { %107 = vsyncadd [#allocation4], 4294967040 }
  0x2a   :  { %56 = vsyncpa [#allocation3], 1 }
  0x2b   :  { %57 = vsyncpa [#allocation4], 1 }

</bundles_post_ra>
